<compile_context>
chip_gen: v7x
topology: tpu7x:2x2x1
jax: 0.10.0
libtpu: 0.0.40
codegen_flags: <defaults>
</compile_context>

<pallas_src>
import functools

import numpy as np
import jax
import jax.numpy as jnp
from jax.experimental import pallas as pl
from jax.experimental.pallas import tpu as pltpu

_VMEM_LIMIT = 48 * 1024 * 1024  # fits v7x (64 MiB physical) and v5e/v6e (128 MiB)


def _round_up(x, m):
    return ((x + m - 1) // m) * m


def _pick_tile(n, candidates):
    for c in candidates:
        if c <= n and n % c == 0:
            return c
    return n


def _pick_row_tile(n, candidates=(512, 256, 128, 64)):
    """Prefer an even row-tile count >= 2 so both v7x TensorCores get work."""
    for c in candidates:
        if c <= n and n % c == 0 and (n // c) >= 2 and (n // c) % 2 == 0:
            return c
    for c in candidates:
        if c <= n and n % c == 0 and (n // c) >= 2:
            return c
    for c in candidates:
        if c <= n and n % c == 0:
            return c
    return n


# ----------------------------------------------------------------------------
# Kernel 1: projection  h0 = x @ W.T   (N, F) x (F, C) -> (N, C)
#           bf16 streams, f32 accumulation in VMEM scratch.
# ----------------------------------------------------------------------------
def _proj_kernel(x_ref, w_ref, o_ref, acc_ref):
    @pl.when(pl.program_id(1) == 0)
    def _():
        acc_ref[...] = jnp.zeros_like(acc_ref)

    acc_ref[...] += jnp.dot(x_ref[...], w_ref[...],
                            preferred_element_type=jnp.float32)

    @pl.when(pl.program_id(1) == pl.num_programs(1) - 1)
    def _():
        o_ref[...] = acc_ref[...].astype(o_ref.dtype)


def _proj_call(x_p, w_p, tm, *, out_dtype):
    Np, Fp = x_p.shape
    Cp = w_p.shape[1]
    tk = _pick_tile(Fp, (512, 256, 128))
    cost = pl.CostEstimate(
        flops=2 * Np * Fp * Cp,
        transcendentals=0,
        bytes_accessed=(Np * Fp * 2                     # x (bf16), read once
                        + (Np // tm) * Fp * Cp * 2      # w re-streamed per row tile
                        + Np * Cp * 2),                 # h0 output (bf16)
    )
    return pl.pallas_call(
        _proj_kernel,
        out_shape=jax.ShapeDtypeStruct((Np, Cp), out_dtype),
        grid=(Np // tm, Fp // tk),
        in_specs=[
            pl.BlockSpec((tm, tk), lambda i, k: (i, k)),
            pl.BlockSpec((tk, Cp), lambda i, k: (k, 0)),
        ],
        out_specs=pl.BlockSpec((tm, Cp), lambda i, k: (i, 0)),
        scratch_shapes=[pltpu.VMEM((tm, Cp), jnp.float32)],
        compiler_params=pltpu.CompilerParams(
            dimension_semantics=("parallel", "arbitrary"),
            vmem_limit_bytes=_VMEM_LIMIT,
        ),
        cost_estimate=cost,
    )(x_p, w_p)


# ----------------------------------------------------------------------------
# Kernel 2: one propagation hop  h <- S @ h  with block-sparse panel skipping.
#           Non-final hops: bf16 output via f32 acc scratch.
#           Final hop: accumulate directly in the resident f32 output block,
#           fuse bias + padding-masked log_softmax into the writeback.
# ----------------------------------------------------------------------------
def _prop_kernel(cnt_ref, tbl_ref, a_ref, h_ref, o_ref, acc_ref):
    i = pl.program_id(0)
    k = pl.program_id(1)

    @pl.when(k == 0)
    def _():
        acc_ref[...] = jnp.zeros_like(acc_ref)

    @pl.when(k < cnt_ref[i])
    def _():
        acc_ref[...] += jnp.dot(a_ref[...], h_ref[...],
                                preferred_element_type=jnp.float32)

    @pl.when(k == pl.num_programs(1) - 1)
    def _():
        o_ref[...] = acc_ref[...].astype(o_ref.dtype)


def _prop_epilogue_kernel(cnt_ref, tbl_ref, a_ref, h_ref, b_ref, o_ref, *,
                          num_classes):
    i = pl.program_id(0)
    k = pl.program_id(1)

    @pl.when(k == 0)
    def _():
        o_ref[...] = jnp.zeros_like(o_ref)

    @pl.when(k < cnt_ref[i])
    def _():
        o_ref[...] += jnp.dot(a_ref[...], h_ref[...],
                              preferred_element_type=jnp.float32)

    @pl.when(k == pl.num_programs(1) - 1)
    def _():
        z = o_ref[...] + b_ref[...]
        # Mask padded class lanes so they neither pollute the softmax nor leave
        # garbage in the padded output buffer.
        col = jax.lax.broadcasted_iota(jnp.int32, z.shape, 1)
        valid = col < num_classes
        zm = jnp.where(valid, z, -jnp.inf)
        m = jnp.max(zm, axis=1, keepdims=True)
        lse = jnp.log(jnp.sum(jnp.exp(zm - m), axis=1, keepdims=True)) + m
        o_ref[...] = jnp.where(valid, z - lse, 0.0).astype(o_ref.dtype)


def _prop_call(cnt, tbl, adj_p, h, b_p, *, tm, tk, max_p, total_panels,
               num_classes, epilogue, out_dtype):
    Np = adj_p.shape[0]
    Cp = h.shape[1]
    nri = Np // tm

    # index_maps receive (grid indices..., *scalar_prefetch_refs).
    adj_map = lambda i, k, cnt_ref, tbl_ref: (i, tbl_ref[i * max_p + k])
    h_map = lambda i, k, cnt_ref, tbl_ref: (tbl_ref[i * max_p + k], 0)
    out_map = lambda i, k, cnt_ref, tbl_ref: (i, 0)

    out_itemsize = jnp.dtype(out_dtype).itemsize
    cost = pl.CostEstimate(
        flops=2 * total_panels * tm * tk * Cp,
        transcendentals=(Np * Cp) if epilogue else 0,
        bytes_accessed=(total_panels * tm * tk * 2     # non-zero adjacency panels (bf16)
                        + total_panels * tk * Cp * 2   # matching h panels (bf16)
                        + Np * Cp * out_itemsize),     # output
    )

    if epilogue:
        kernel = functools.partial(_prop_epilogue_kernel,
                                   num_classes=num_classes)
        in_specs = [
            pl.BlockSpec((tm, tk), adj_map),
            pl.BlockSpec((tk, Cp), h_map),
            pl.BlockSpec((1, Cp), lambda i, k, cnt_ref, tbl_ref: (0, 0)),
        ]
        scratch = []                                   # accumulate in o_ref (f32)
        operands = (cnt, tbl, adj_p, h, b_p)
    else:
        kernel = _prop_kernel
        in_specs = [
            pl.BlockSpec((tm, tk), adj_map),
            pl.BlockSpec((tk, Cp), h_map),
        ]
        scratch = [pltpu.VMEM((tm, Cp), jnp.float32)]
        operands = (cnt, tbl, adj_p, h)

    grid_spec = pltpu.PrefetchScalarGridSpec(
        num_scalar_prefetch=2,
        grid=(nri, max_p),
        in_specs=in_specs,
        out_specs=pl.BlockSpec((tm, Cp), out_map),
        scratch_shapes=scratch,
    )
    return pl.pallas_call(
        kernel,
        out_shape=jax.ShapeDtypeStruct((Np, Cp), out_dtype),
        grid_spec=grid_spec,
        compiler_params=pltpu.CompilerParams(
            dimension_semantics=("parallel", "arbitrary"),
            vmem_limit_bytes=_VMEM_LIMIT,
        ),
        cost_estimate=cost,
    )(*operands)


# ----------------------------------------------------------------------------
# Cached preparation (adjacency padding/cast, block-sparse table, tiles).
# ----------------------------------------------------------------------------
def _build_panel_table(adj_p, tm, tk):
    """Per-row-tile list of non-zero (tm, tk) adjacency panels (host-side).

    Padded slots repeat the last valid panel id so consecutive grid steps map
    to the same block and Pallas skips the redundant DMA.  Table is flattened
    to 1D to avoid SMEM 2D padding blowup.
    """
    Np = adj_p.shape[0]
    nri, nci = Np // tm, Np // tk
    blk = np.asarray(jax.device_get(
        jnp.any(adj_p.reshape(nri, tm, nci, tk) != 0, axis=(1, 3))))
    counts = blk.sum(axis=1).astype(np.int32)
    max_p = max(int(counts.max()), 1)
    tbl = np.zeros((nri, max_p), dtype=np.int32)
    for r in range(nri):
        nz = np.nonzero(blk[r])[0].astype(np.int32)
        if nz.size:
            tbl[r, :nz.size] = nz
            tbl[r, nz.size:] = nz[-1]
    return (jnp.asarray(counts), jnp.asarray(tbl.reshape(-1)),
            int(max_p), int(counts.sum()))


def sgcn_prepare(adj_norm, w_t, b):
    """One-time (cached=True SGConv) prep.  adj_norm/w_t/b must be concrete."""
    N = adj_norm.shape[0]
    F, C = w_t.shape
    Np = _round_up(max(N, 128), 128)
    Fp = _round_up(max(F, 128), 128)
    Cp = _round_up(max(C, 128), 128)

    tm = _pick_row_tile(Np)
    tk = _pick_tile(Np, (512, 256, 128))

    # Zero-padded, (8,128)-aligned, bf16 streaming operands (f32 accumulation
    # inside the kernels).
    adj_p = jnp.zeros((Np, Np), jnp.bfloat16).at[:N, :N].set(
        jnp.asarray(adj_norm, jnp.float32).astype(jnp.bfloat16))
    w_p = jnp.zeros((Fp, Cp), jnp.bfloat16).at[:F, :C].set(
        jnp.asarray(w_t, jnp.float32).astype(jnp.bfloat16))
    b_p = jnp.zeros((1, Cp), jnp.float32).at[0, :C].set(
        jnp.asarray(b, jnp.float32).reshape(C))

    cnt, tbl, max_p, total_panels = _build_panel_table(adj_p, tm, tk)

    return dict(N=N, F=F, C=C, Np=Np, Fp=Fp, Cp=Cp, tm=tm, tk=tk,
                adj_p=adj_p, w_p=w_p, b_p=b_p,
                cnt=cnt, tbl=tbl, max_p=max_p, total_panels=total_panels)


def sgcn_forward(cache, x, *, K=2):
    """out = log_softmax((S^K x) @ W.T + b), computed as S^K (x @ W.T) + b."""
    N, F, C = cache["N"], cache["F"], cache["C"]
    Np, Fp = cache["Np"], cache["Fp"]
    tm, tk = cache["tm"], cache["tk"]

    x_p = jnp.zeros((Np, Fp), jnp.bfloat16).at[:N, :F].set(
        jnp.asarray(x, jnp.float32).astype(jnp.bfloat16))

    # Reassociation: project to class width first, then propagate the narrow
    # (N, C) intermediate through the K hops.
    h = _proj_call(x_p, cache["w_p"], tm, out_dtype=jnp.bfloat16)

    for hop in range(K):
        last = hop == K - 1
        h = _prop_call(cache["cnt"], cache["tbl"], cache["adj_p"], h,
                       cache["b_p"], tm=tm, tk=tk, max_p=cache["max_p"],
                       total_panels=cache["total_panels"], num_classes=C,
                       epilogue=last,
                       out_dtype=jnp.float32 if last else jnp.bfloat16)

    return h[:N, :C]


def build_normalized_adjacency(edge_index, num_nodes):
    """Dense gcn_norm: S = D^{-1/2} (A + I) D^{-1/2}, S[dst, src] layout
    matching PyG's source_to_target message passing."""
    src, dst = edge_index[0], edge_index[1]
    a_hat = jnp.zeros((num_nodes, num_nodes), dtype=jnp.float32)
    a_hat = a_hat.at[dst, src].add(1.0)        # duplicates accumulate like PyG
    a_hat = a_hat + jnp.eye(num_nodes, dtype=jnp.float32)
    deg = jnp.sum(a_hat, axis=1)               # in-degree incl. self loop
    dinv = jnp.where(deg > 0, 1.0 / jnp.sqrt(deg), 0.0)
    return dinv[:, None] * a_hat * dinv[None, :]


if __name__ == "__main__":
    # Small deterministic problem: 32 nodes, 16 input features, 8 classes, K=2.
    N, F, C, K = 32, 16, 8, 2
    E = 64  # directed edges before symmetrization

    key = jax.random.PRNGKey(0)
    k_x, k_e, k_w, k_b = jax.random.split(key, 4)

    x = jax.random.normal(k_x, (N, F), dtype=jnp.float32)

    e = jax.random.randint(k_e, (2, E), 0, N, dtype=jnp.int32)
    edge_index = jnp.concatenate([e, e[::-1]], axis=1)  # (2, 2E) undirected

    # torch Linear params: W (C, F), b (C,)
    w = jax.random.normal(k_w, (C, F), dtype=jnp.float32) * (1.0 / jnp.sqrt(F))
    b = jax.random.normal(k_b, (C,), dtype=jnp.float32) * 0.01

    adj_norm = build_normalized_adjacency(edge_index, N)

    cache = sgcn_prepare(adj_norm, w.T, b)   # cached once (SGConv cached=True)
    out = sgcn_forward(cache, x, K=K)
    out = jax.block_until_ready(out)

    # Pure-JAX f32 reference.  The kernels stream bf16 with f32 accumulation,
    # so tolerances are loosened accordingly.
    h_ref = x
    for _ in range(K):
        h_ref = adj_norm @ h_ref
    z_ref = h_ref @ w.T + b
    ref = jax.nn.log_softmax(z_ref, axis=1)

    assert out.shape == (N, C), "bad output shape"
    assert bool(jnp.all(jnp.isfinite(out))), "non-finite output"
    assert jnp.allclose(out, ref, atol=5e-2, rtol=5e-2), "mismatch vs reference"

    print("KERNEL_OK")
</pallas_src>

<mosaic_0001>
module attributes {stable_mosaic.version = 11 : i64} {
  func.func @_proj_kernel(%arg0: i32, %arg1: i32, %arg2: memref<64x128xbf16, #tpu.memory_space<vmem>>, %arg3: memref<128x128xbf16, #tpu.memory_space<vmem>>, %arg4: memref<64x128xbf16, #tpu.memory_space<vmem>>, %arg5: memref<64x128xf32, #tpu.memory_space<vmem>>) attributes {dimension_semantics = [#tpu.dimension_semantics<parallel>, #tpu.dimension_semantics<arbitrary>], iteration_bounds = array<i64: 2, 1>, scalar_prefetch = 0 : i64, scratch_operands = 1 : i64, tpu.core_type = #tpu.core_type<tc>, window_params = [{transform_indices = @transform_0, window_bounds = array<i64: 64, 128>}, {transform_indices = @transform_1, window_bounds = array<i64: 128, 128>}, {transform_indices = @transform_2, window_bounds = array<i64: 64, 128>}]} {
    %c0_i32 = arith.constant 0 : i32
    %0 = arith.cmpi eq, %arg1, %c0_i32 : i32
    %1 = arith.extui %0 : i1 to i32
    %c0_i32_0 = arith.constant 0 : i32
    %2 = arith.cmpi ne, %1, %c0_i32_0 : i32
    scf.if %2 {
      %cst_10 = arith.constant 0.000000e+00 : f32
      %12 = vector.broadcast %cst_10 : f32 to vector<64x128xf32>
      %c0_11 = arith.constant 0 : index
      %c0_12 = arith.constant 0 : index
      %13 = vector.load %arg5[%c0_11, %c0_12] : memref<64x128xf32, #tpu.memory_space<vmem>>, vector<64x128xf32>
      tpu.vector_store %arg5[%c0_11, %c0_12], %12 {strides = array<i32>} : memref<64x128xf32, #tpu.memory_space<vmem>>, vector<64x128xf32>,
    } else {
    }
    %c0 = arith.constant 0 : index
    %c0_1 = arith.constant 0 : index
    %3 = vector.load %arg5[%c0, %c0_1] : memref<64x128xf32, #tpu.memory_space<vmem>>, vector<64x128xf32>
    %c0_2 = arith.constant 0 : index
    %c0_3 = arith.constant 0 : index
    %4 = vector.load %arg2[%c0_2, %c0_3] : memref<64x128xbf16, #tpu.memory_space<vmem>>, vector<64x128xbf16>
    %c0_4 = arith.constant 0 : index
    %c0_5 = arith.constant 0 : index
    %5 = vector.load %arg3[%c0_4, %c0_5] : memref<128x128xbf16, #tpu.memory_space<vmem>>, vector<128x128xbf16>
    %cst = arith.constant dense<0.000000e+00> : vector<64x128xf32>
    %6 = tpu.matmul %4, %5, %cst {dimension_numbers = #tpu.dot_dimension_numbers<[1], [0], [0], [1], [0, 0, 1, 1], [], []>} : vector<64x128xbf16>, vector<128x128xbf16>, vector<64x128xf32> -> vector<64x128xf32>
    %7 = arith.addf %3, %6 : vector<64x128xf32>
    %c0_6 = arith.constant 0 : index
    %c0_7 = arith.constant 0 : index
    %8 = vector.load %arg5[%c0_6, %c0_7] : memref<64x128xf32, #tpu.memory_space<vmem>>, vector<64x128xf32>
    tpu.vector_store %arg5[%c0_6, %c0_7], %7 {strides = array<i32>} : memref<64x128xf32, #tpu.memory_space<vmem>>, vector<64x128xf32>,
    %c0_i32_8 = arith.constant 0 : i32
    %9 = arith.cmpi eq, %arg1, %c0_i32_8 : i32
    %10 = arith.extui %9 : i1 to i32
    %c0_i32_9 = arith.constant 0 : i32
    %11 = arith.cmpi ne, %10, %c0_i32_9 : i32
    scf.if %11 {
      %c0_10 = arith.constant 0 : index
      %c0_11 = arith.constant 0 : index
      %12 = vector.load %arg5[%c0_10, %c0_11] : memref<64x128xf32, #tpu.memory_space<vmem>>, vector<64x128xf32>
      %13 = arith.truncf %12 : vector<64x128xf32> to vector<64x128xbf16>
      %c0_12 = arith.constant 0 : index
      %c0_13 = arith.constant 0 : index
      %14 = vector.load %arg4[%c0_12, %c0_13] : memref<64x128xbf16, #tpu.memory_space<vmem>>, vector<64x128xbf16>
      tpu.vector_store %arg4[%c0_12, %c0_13], %13 {strides = array<i32>} : memref<64x128xbf16, #tpu.memory_space<vmem>>, vector<64x128xbf16>,
    } else {
    }
    return
  }
  func.func @transform_0(%arg0: i32, %arg1: i32) -> (i32, i32) {
    %c0_i32 = arith.constant 0 : i32
    return %arg0, %arg1 : i32, i32
  }
  func.func @transform_1(%arg0: i32, %arg1: i32) -> (i32, i32) {
    %c0_i32 = arith.constant 0 : i32
    %c0_i32_0 = arith.constant 0 : i32
    return %arg1, %c0_i32 : i32, i32
  }
  func.func @transform_2(%arg0: i32, %arg1: i32) -> (i32, i32) {
    %c0_i32 = arith.constant 0 : i32
    %c0_i32_0 = arith.constant 0 : i32
    return %arg0, %c0_i32 : i32, i32
  }
}

</mosaic_0001>

<bundles_post_ra>
// kernel: tpu_custom_call.1
= control target key start
LH: loop header
LB: loop body
LE: loop exit
PB: predicated region body
PF: predicated region fallthrough
CT: control target
= control target key end

     0   :  { %7 = vsyncpa [#allocation4], 0  ;;  %s1175_s0 = inlined_call_operand.hbm [shape: bf16[128,128], index: 0, kind: input, shape index: {}]   ;;  %s1176_s1 = inlined_call_operand.hbm [shape: bf16[128,128], index: 1, kind: input, shape index: {}]   ;;  %s1177_s2 = inlined_call_operand.hbm [shape: bf16[128,128], index: 2, kind: output, shape index: {}]  }
   0x1   :  { %9 = vsyncpa [#allocation4 + $0x1], 0 }
   0x2   :  { %10 = vsyncpa [#allocation7], 0 }
   0x3   :  { %11 = vsyncpa [#allocation5], 0 }
   0x4   :  { %13 = vsyncpa [#allocation5 + $0x1], 0  ;;  %s940_s9 = smov 0   ;;  %s942_s10 = smov 0  }
   0x5   :  { %s944_s11 = smov 0   ;;  %s946_s12 = smov 0  }
   0x6   :  { %s948_s13 = smov 0   ;;  %s950_s14 = smov 0  }
   0x7 LB: > { %s561_s15 = sadd.s32 4294967295, %s916_s14   ;;  %s562_s16 = sadd.s32 4294967294, %s916_s14   ;;  %s916_s14 = sphi %s950_s14, %s19_s14   ;;  %s912_s13 = sphi %s948_s13, %s1201_s13   ;;  %s908_s12 = sphi %s946_s12, %s1200_s12   ;;  %s904_s11 = sphi %s944_s11, %s1199_s11   ;;  %s900_s10 = sphi %s942_s10, %s1198_s10   ;;  %s896_s9 = sphi %s940_s9, %s1197_s9  }
   0x8   : > { %p53_p0 = scmp.ne.s32.totalorder %s900_s10, %s896_s9  ;;  %p974_p1 = scmp.eq.s32.totalorder %s561_s15, 0 }
   0x9   : > { %p978_p2 = scmp.eq.s32.totalorder %s561_s15, 1  ;;  %p109_p3 = scmp.eq.s32.totalorder %s562_s16, 1 }
   0xa   : > { %s1182_s17 = scalar_select %p974_p1, 1, 0 }
   0xb   : > { %s1183_s18 = scalar_select %p978_p2, 1, 0 }
   0xc   : > { %p984_p4 = por %p974_p1, %p53_p0  ;;  %p563_p5 = scmp.ge.s32.totalorder %s916_s14, 1 }
   0xd   : > { %p989_p6 = por %p109_p3, %p53_p0  ;;  %p116_p7 = scmp.lt.s32.totalorder %s916_s14, 3 }
   0xe   : > { %s1184_s19 = scalar_select %p984_p4, 1, 0 }
   0xf   : > { %s1185_s20 = scalar_select %p989_p6, 1, 0 }
  0x10   : > { %p994_p8 = pnand %p563_p5, %p116_p7  ;;  %s918_s22 = smov [#allocation6]  }
  0x11   : > { %s131_s23 = sshll.u32 %s918_s22, 4  ;;  %s31_s25 = sadd.s32 1, %s912_s13  ;;  %s132_s23 = int_to_ptr.vmem [resolvable:$true] %s131_s23 }
  0x12   : > { %s1186_s21 = scalar_select %p994_p8, 1, 0 }
  0x13   : > { %p691_p9 = pneg %p994_p8  ;;  %s772_s28 = scalar_lea.hbm %s1176_s1, 1024 }
  0x14   : > { %p773_p12 = scmp.ne.s32.totalorder %s1176_s1, %s772_s28  ;;  %p779_p5 = scmp.lt.u32.totalorder %s772_s28, %s1176_s1 }
  0x15   : > { %p1003_p11 = pnand %p691_p9, %p974_p1 }
  0x17   : > { %p774_p13 = pneg %p1003_p11 }
  0x19   : > { %p775_p0 = pnand %p774_p13, %p773_p12 }
  0x1b   : > { %p776_p3 = pneg %p775_p0 }
  0x1d   : > { %p781_p7 = pnand %p779_p5, %p776_p3 }
  0x1f   : > { %784 = shalt.err (!%p781_p7)
}
  0x20   : > { %s785_s5 = scalar_lea.vmem %s132_s23, 1024  ;;  %p793_p1 = scmp.lt.s32.totalorder %s132_s23, %s132_s23 }
  0x21   : > { %p786_p9 = scmp.ne.s32.totalorder %s132_s23, %s785_s5  ;;  %p794_p4 = scmp.lt.s32.totalorder %s785_s5, %s785_s5 }
  0x23   : > { %p788_p10 = pnand %p786_p9, %p774_p13  ;;  %p795_p8 = por %p794_p4, %p793_p1 }
  0x25   : > { %p789_p6 = pneg %p788_p10 }
  0x27   : > { %p796_p2 = pnand %p795_p8, %p789_p6 }
  0x29   : > { %799 = shalt.err (!%p796_p2)
}
  0x2a   : > { %s919_s6 = smov 64   ;;  %s920_s7 = smov 4  }
  0x2b   : > { %694 = dma.hbm_to_vmem [thread:$0]  (!%p1003_p11), %s1176_s1, 1024, %s132_s23, [#allocation7], %s919_s6, %s919_s6, %s920_s7  }
  0x2c   : > { %p33_p1 = scmp.ge.s32.totalorder %s31_s25, 2  ;;  %s40_s16 = sadd.s32 1, %s904_s11 }
  0x2d   : > { %p47_p2 = scmp.ne.s32.totalorder %s904_s11, %s900_s10  ;;  %p48_p4 = scmp.eq.s32.totalorder %s916_s14, 0 }
  0x2e   : > { %s1203_s25 = smov (%p33_p1, %s31_s25), 0  ;;  %p1189_p8 = scmp.ne.s32.totalorder %s1183_s18, 0 }
  0x2f   : > { %p1033_p6 = por %p48_p4, %p47_p2  ;;  %s35_s26 = ssub.s32 %s912_s13, %s1203_s25 }
  0x30   : > { %p1039_p10 = por %p1189_p8, %p47_p2  ;;  %p704_p12 = scmp.lt.s32.totalorder %s916_s14, 2 }
  0x31   : > { %p38_p11 = scmp.eq.s32.totalorder %s35_s26, 0  ;;  %s145_s23 = sand.u32 1, %s904_s11  }
  0x32   : > { %s566_s27 = sshll.u32 %s145_s23, 5  ;;  %s598_s29 = sshll.u32 %s912_s13, 9 }
  0x33   : > { %s1048_s28 = scalar_select %p38_p11, %s904_s11, %s40_s16  }
  0x34   : > { %s1054_s4 = scalar_lea.hbm %s1175_s0, %s598_s29  ;;  %s149_s18 = scalar_lea.vmem [#allocation3], %s566_s27 }
  0x35   : > { %s157_s5 = sshll.u32 %s149_s18, 4  ;;  %p1060_p13 = pnand %p704_p12, %p1033_p6  ;;  %s1056_s5 = int_to_ptr.vmem [resolvable:$true] %s157_s5 }
  0x36   : > { %s1064_s15 = scalar_lea.sflag [#allocation4], %s145_s23  ;;  %s800_s16 = scalar_lea.hbm %s1054_s4, 512 }
  0x37   : > { %p801_p0 = scmp.ne.s32.totalorder %s1054_s4, %s800_s16  ;;  %p802_p3 = pneg %p1060_p13 }
  0x38   : > { %s805_s22 = scalar_lea.hbm %s1175_s0, 1024  ;;  %p806_p9 = scmp.lt.u32.totalorder %s1054_s4, %s1175_s0 }
  0x39   : > { %p803_p5 = pnand %p802_p3, %p801_p0  ;;  %p807_p1 = scmp.lt.u32.totalorder %s805_s22, %s800_s16 }
  0x3a   : > { %p809_p4 = scmp.lt.u32.totalorder %s800_s16, %s1054_s4 }
  0x3b   : > { %p804_p7 = pneg %p803_p5  ;;  %p808_p2 = por %p807_p1, %p806_p9 }
  0x3d   : > { %p810_p6 = por %p809_p4, %p808_p2 }
  0x3f   : > { %p811_p8 = pnand %p810_p6, %p804_p7 }
  0x41   : > { %814 = shalt.err (!%p811_p8)
}
  0x42   : > { %s815_s23 = scalar_lea.vmem %s1056_s5, 512  ;;  %s921_s3 = smov [#allocation3]  }
  0x43   : > { %p816_p12 = scmp.ne.s32.totalorder %s1056_s5, %s815_s23  ;;  %s820_s18 = sshll.u32 %s921_s3, 4  ;;  %s821_s18 = int_to_ptr.vmem [resolvable:$false] %s820_s18 }
  0x44   : > { %s822_s26 = scalar_lea.vmem %s821_s18, 1024  ;;  %p823_p5 = scmp.lt.s32.totalorder %s1056_s5, %s821_s18 }
  0x45   : > { %p818_p11 = pnand %p816_p12, %p802_p3  ;;  %p824_p9 = scmp.lt.s32.totalorder %s822_s26, %s815_s23 }
  0x47   : > { %p819_p0 = pneg %p818_p11  ;;  %p825_p1 = por %p824_p9, %p823_p5 }
  0x49   : > { %p826_p2 = pnand %p825_p1, %p819_p0 }
  0x4b   : > { %829 = shalt.err (!%p826_p2)
}
  0x4c   : > { %698 = dma.hbm_to_vmem [thread:$0]  (!%p1060_p13), %s1054_s4, 512, %s1056_s5, %s1064_s15, %s919_s6, %s919_s6, %s920_s7  }
  0x4d   : > { %p1192_p3 = scmp.ne.s32.totalorder %s1186_s21, 0 }
  0x4e   : > { %s1098_s16 = sand.u32 (!%p1192_p3), 1, %s900_s10   ;;  %p1193_p7 = scmp.ne.s32.totalorder (!%p1192_p3), %s1184_s19, 0 }
  0x4f   : > { %169 = sbr.rel (%p1192_p3) target bundleno = 355 (0x163), region = 28  ;;  %s570_s27 = sshll.u32 (!%p1192_p3), %s1098_s16, 5 }
  0x50   : > { %s172_s22 = scalar_lea.sflag (!%p1192_p3), [#allocation4], %s1098_s16  ;;  %s1104_s8 = scalar_lea.vmem (!%p1192_p3), [#allocation3], %s570_s27 }
  0x56   : > { %883 = dma.done.wait (%p1193_p7), %s172_s22, 512  }
  0x57   : > { %885 = vsyncadd (%p1193_p7), %s172_s22, 4294966784  ;;  %p1194_p13 = scmp.ne.s32.totalorder %s1182_s17, 0 }
  0x59   : > { %887 = dma.done.wait (%p1194_p13), [#allocation7], 1024  }
  0x5a   : > { %889 = vsyncadd (%p1194_p13), [#allocation7], 4294966272  ;;  %v760_v0 = vld [vmem:[#allocation6] sm:$0xff]   ;;  %v761_v1 = vld [vmem:[#allocation6 + $0x8] sm:$0xff]   ;;  %s199_s17 = scalar_lea.vmem [#allocation8], %s570_s27  ;;  %s607_s21 = sshll.u32 %s908_s12, 9 }
  0x5b   : > { %643 = vmatprep.subr.bf16.mxu0 %v760_v0  ;;  %667 = vmatprep.subr.bf16.mxu1 %v760_v0  ;;  %v762_v2 = vld [vmem:[#allocation6 + $0x10] sm:$0xff]   ;;  %v763_v3 = vld [vmem:[#allocation6 + $0x18] sm:$0xff]   ;;  %v768_v4 = vld [vmem:[%s1104_s8] sm:$0xff]   ;;  %s466_s19 = sshll.u32 %s199_s17, 4  ;;  %s1126_s4 = scalar_lea.hbm %s1177_s2, %s607_s21  ;;  %s1121_s19 = int_to_ptr.vmem [resolvable:$true] %s466_s19 }
  0x5c   : > { %644 = vmatpush3.bf16.msra.mxu0 %v760_v0  ;;  %675 = vmatpush3.bf16.msra.mxu1 %v760_v0  ;;  %v769_v5 = vld [vmem:[%s1104_s8 + $0x10] sm:$0xff]   ;;  %v764_v6 = vld [vmem:[#allocation6 + $0x20] sm:$0xff]   ;;  %v765_v7 = vld [vmem:[#allocation6 + $0x28] sm:$0xff]   ;;  %s453_s12 = scalar_lea.sflag [#allocation5], %s1098_s16  ;;  %s830_s5 = scalar_lea.vmem %s1121_s19, 512 }
  0x5d   : > { %645 = vmatprep.subr.bf16.mxu0 %v761_v1  ;;  %668 = vmatprep.subr.bf16.mxu1 %v761_v1  ;;  %v766_v8 = vld [vmem:[#allocation6 + $0x30] sm:$0xff]   ;;  %v767_v9 = vld [vmem:[#allocation6 + $0x38] sm:$0xff]   ;;  %v770_v10 = vld [vmem:[%s1104_s8 + $0x8] sm:$0xff]   ;;  %p831_p4 = scmp.ne.s32.totalorder %s1121_s19, %s830_s5  ;;  %s922_s15 = smov [#allocation8]  }
  0x5e   : > { %659 = vmatprep.mubr.bf16.mxu0 %v768_v4  ;;  %663 = vmatprep.mubr.bf16.mxu1 %v769_v5  ;;  %v771_v11 = vld [vmem:[%s1104_s8 + $0x18] sm:$0xff]   ;;  %s834_s29 = sshll.u32 %s922_s15, 4  ;;  %s835_s29 = int_to_ptr.vmem [resolvable:$false] %s834_s29 }
  0x5f   : > { %p832_p6 = pnand %p831_p4, %p1039_p10  ;;  %s836_s30 = scalar_lea.vmem %s835_s29, 1024 }
  0x60   : > { %646 = vmatpush3.bf16.msra.mxu0 %v761_v1  ;;  %676 = vmatpush3.bf16.msra.mxu1 %v761_v1  ;;  %p837_p12 = scmp.lt.s32.totalorder %s1121_s19, %s835_s29  ;;  %p838_p11 = scmp.lt.s32.totalorder %s836_s30, %s830_s5 }
  0x61   : > { %647 = vmatprep.subr.bf16.mxu0 %v762_v2  ;;  %669 = vmatprep.subr.bf16.mxu1 %v762_v2  ;;  %p833_p8 = pneg %p832_p6 }
  0x62   : > { %p839_p0 = por %p838_p11, %p837_p12 }
  0x64   : > { %648 = vmatpush3.bf16.msra.mxu0 %v762_v2  ;;  %677 = vmatpush3.bf16.msra.mxu1 %v762_v2  ;;  %p840_p5 = pnand %p839_p0, %p833_p8 }
  0x65   : > { %649 = vmatprep.subr.bf16.mxu0 %v763_v3  ;;  %670 = vmatprep.subr.bf16.mxu1 %v763_v3 }
  0x68   : > { %650 = vmatpush3.bf16.msra.mxu0 %v763_v3  ;;  %678 = vmatpush3.bf16.msra.mxu1 %v763_v3 }
  0x69   : > { %651 = vmatprep.subr.bf16.mxu0 %v764_v6  ;;  %671 = vmatprep.subr.bf16.mxu1 %v764_v6 }
  0x6c   : > { %652 = vmatpush3.bf16.msra.mxu0 %v764_v6  ;;  %679 = vmatpush3.bf16.msra.mxu1 %v764_v6 }
  0x6d   : > { %653 = vmatprep.subr.bf16.mxu0 %v765_v7  ;;  %672 = vmatprep.subr.bf16.mxu1 %v765_v7 }
  0x70   : > { %654 = vmatpush3.bf16.msra.mxu0 %v765_v7  ;;  %680 = vmatpush3.bf16.msra.mxu1 %v765_v7 }
  0x71   : > { %655 = vmatprep.subr.bf16.mxu0 %v766_v8  ;;  %673 = vmatprep.subr.bf16.mxu1 %v766_v8 }
  0x74   : > { %656 = vmatpush3.bf16.msra.mxu0 %v766_v8  ;;  %681 = vmatpush3.bf16.msra.mxu1 %v766_v8 }
  0x75   : > { %657 = vmatprep.subr.bf16.mxu0 %v767_v9  ;;  %674 = vmatprep.subr.bf16.mxu1 %v767_v9 }
  0x78   : > { %658 = vmatpush3.bf16.msra.mxu0 %v767_v9  ;;  %682 = vmatpush3.bf16.msra.mxu1 %v767_v9 }
  0x7b   : > { %660 = vmatmul.mubr.bf16.vlgmr.msra.gmra.mrb[0].mxu0 %v770_v10  ;;  %664 = vmatmul.mubr.bf16.vlgmr.msra.gmra.mrb[0].mxu1 %v771_v11 }
 0x14e   : > { %v661_v12 = vpop.f32.mrb[0].mxu0  ;;  %v665_v13 = vpop.f32.mrb[0].mxu1 }
 0x14f   : > { %v354_v14 = vpop.f32.mrb[1].mxu0  ;;  %v370_v15 = vpop.f32.mrb[1].mxu1 }
 0x150   : > { %v662_v16 = vpop.f32.mrb[2].mxu0  ;;  %v666_v17 = vpop.f32.mrb[2].mxu1 }
 0x151   : > { %v616_v18 = vpack.c.bf16 %v662_v16, %v661_v12  ;;  %v626_v19 = vpack.c.bf16 %v666_v17, %v665_v13  ;;  %v357_v20 = vpop.f32.mrb[3].mxu0  ;;  %v373_v21 = vpop.f32.mrb[3].mxu1 }
 0x152   : > { %v611_v22 = vpack.c.bf16 %v357_v20, %v354_v14  ;;  %v621_v23 = vpack.c.bf16 %v373_v21, %v370_v15 }
 0x153   : > { %628 = vst [vmem:[%s199_s17 + $0x8] sm:$0xff] %v616_v18   ;;  %630 = vst [vmem:[%s199_s17 + $0x18] sm:$0xff] %v626_v19  }
 0x154   : > { %612 = vst [vmem:[%s199_s17] sm:$0xff] %v611_v22   ;;  %629 = vst [vmem:[%s199_s17 + $0x10] sm:$0xff] %v621_v23  }
 0x155   : > { %843 = shalt.err (!%p840_p5)
}
 0x156   : > { %s844_s23 = scalar_lea.hbm %s1126_s4, 512  ;;  %s848_s26 = scalar_lea.hbm %s1177_s2, 1024 }
 0x157   : > { %p845_p9 = scmp.ne.s32.totalorder %s1126_s4, %s844_s23  ;;  %p849_p3 = scmp.lt.u32.totalorder %s1126_s4, %s1177_s2 }
 0x158   : > { %p850_p7 = scmp.lt.u32.totalorder %s848_s26, %s844_s23  ;;  %p852_p4 = scmp.lt.u32.totalorder %s844_s23, %s1126_s4 }
 0x159   : > { %p846_p1 = pnand %p845_p9, %p1039_p10 }
 0x15a   : > { %p851_p13 = por %p850_p7, %p849_p3 }
 0x15b   : > { %p847_p2 = pneg %p846_p1 }
 0x15c   : > { %p853_p6 = por %p852_p4, %p851_p13 }
 0x15e   : > { %p854_p8 = pnand %p853_p6, %p847_p2 }
 0x160   : > { %857 = shalt.err (!%p854_p8)
}
 0x161   : > { %s923_s8 = smov 64   ;;  %s924_s17 = smov 4  }
 0x162   : > { %689 = dma.vmem_to_hbm [thread:$0]  (%p1039_p10), %s1121_s19, 512, %s1126_s4, %s453_s12, %s923_s8, %s923_s8, %s924_s17  }
 0x163 PF: > { %s481_s21 = sand.u32 1, %s896_s9   ;;  %p1195_p12 = scmp.ne.s32.totalorder %s1185_s20, 0 }
 0x164   : > { %p1196_p11 = scmp.ge.s32.totalorder %s916_s14, 2  ;;  %s482_s6 = scalar_lea.sflag [#allocation5], %s481_s21 }
 0x166   : > { %p700_p0 = pnand %p1196_p11, %p1195_p12 }
 0x168   : > { %891 = dma.done.wait (!%p700_p0), %s482_s6, 512  }
 0x169   : > { %893 = vsyncadd (!%p700_p0), %s482_s6, 4294966784  ;;  %s19_s14 = sadd.s32 1, %s916_s14   ;;  %s1197_s9 = smov %s900_s10 }
 0x16a   : > { %p16_p5 = scmp.ge.s32.totalorder %s19_s14, 4   ;;  %s1198_s10 = smov %s904_s11 }
 0x16b   : > { %s1199_s11 = smov %s1048_s28  ;;  %s1200_s12 = smov %s912_s13 }
 0x16c   : > { %s1201_s13 = smov %s1203_s25  ;;  %18 = sbr.rel (!%p16_p5) target bundleno = 7 (0x7), region = 86 }
 0x173   :  { %487 = vsyncpa [#allocation4], 1 }
 0x174   :  { %489 = vsyncpa [#allocation4 + $0x1], 1 }
 0x175   :  { %490 = vsyncpa [#allocation7], 1 }
 0x176   :  { %491 = vsyncpa [#allocation5], 1 }
 0x177   :  { %493 = vsyncpa [#allocation5 + $0x1], 1 }

</bundles_post_ra>
